<compile_context>
chip_gen: v7x
topology: tpu7x:2x2x1
jax: 0.10.0
libtpu: 0.0.40
codegen_flags: <defaults>
</compile_context>

<pallas_src>
import functools

import jax
import jax.numpy as jnp
from jax.experimental import pallas as pl
from jax.experimental.pallas import tpu as pltpu


def _adain_kernel(c_ref, s_ref, o_ref, *, eps, hw):
    # c_ref / s_ref / o_ref are (1, TC, HW) VMEM tiles.
    c = c_ref[...].astype(jnp.float32)
    s = s_ref[...].astype(jnp.float32)

    # Per-channel mean over the (lane-dense) flattened spatial axis.
    mean_c = jnp.mean(c, axis=-1, keepdims=True)
    mean_s = jnp.mean(s, axis=-1, keepdims=True)

    # Unbiased variance (matches torch.var_mean's default correction=1).
    # Two-pass form kept for numerical parity with torch.var_mean.
    var_c = jnp.sum((c - mean_c) ** 2, axis=-1, keepdims=True) / (hw - 1.0)
    var_s = jnp.sum((s - mean_s) ** 2, axis=-1, keepdims=True) / (hw - 1.0)

    # Fold the affine into one per-channel scale/shift:
    #   out = c * (std_s / std_c) + (mean_s - mean_c * std_s / std_c)
    inv_std_c = jax.lax.rsqrt(var_c + eps)          # EUP rsqrt, no divide
    std_s = jnp.sqrt(var_s + eps)
    scale = std_s * inv_std_c
    shift = mean_s - scale * mean_c

    o_ref[...] = (c * scale + shift).astype(o_ref.dtype)


def _choose_channel_tile(C, HW, itemsize, budget_bytes=12 * 1024 * 1024):
    """Largest channel tile TC that (a) divides C, (b) satisfies the TPU
    (8, 128) block constraint (TC == C or TC % 8 == 0), and (c) keeps the
    double-buffered I/O + f32 temporaries under a conservative VMEM budget
    (safe for v5e/v6e default scoped limits and v7x's 64 MiB physical VMEM)."""

    def cost(tc):
        io = 3 * 2 * tc * HW * itemsize   # (2 inputs + 1 output) x 2 pipeline bufs
        tmp = 4 * tc * HW * 4             # f32 upcasts / intermediates
        return io + tmp

    divisors = [d for d in range(1, C + 1) if C % d == 0]
    valid = [d for d in divisors if d == C or d % 8 == 0]   # never empty (d=C valid)
    fitting = [d for d in valid if cost(d) <= budget_bytes]
    if fitting:
        return max(fitting)
    return min(valid)


def adain(content: jax.Array, style: jax.Array, epsilon: float = 1e-5) -> jax.Array:
    """AdaIN forward. content/style: (N, C, H, W), same shape & dtype."""
    assert content.shape == style.shape
    assert content.dtype == style.dtype
    N, C, H, W = content.shape
    HW = H * W

    # Flatten spatial dims so the last (lane) axis is dense; free reshape.
    c2 = content.reshape(N, C, HW)
    s2 = style.reshape(N, C, HW)

    TC = _choose_channel_tile(C, HW, jnp.dtype(content.dtype).itemsize)

    kernel = functools.partial(_adain_kernel, eps=float(epsilon), hw=float(HW))

    spec = pl.BlockSpec((1, TC, HW), lambda n, c: (n, c, 0))

    out = pl.pallas_call(
        kernel,
        out_shape=jax.ShapeDtypeStruct((N, C, HW), content.dtype),
        grid_spec=pltpu.PrefetchScalarGridSpec(
            num_scalar_prefetch=0,
            grid=(N, C // TC),
            in_specs=[spec, spec],
            out_specs=spec,
        ),
        compiler_params=pltpu.CompilerParams(
            # Stats are per-(n, c): both grid axes are independent.
            dimension_semantics=("parallel", "parallel"),
            vmem_limit_bytes=32 * 1024 * 1024,
        ),
    )(c2, s2)

    return out.reshape(N, C, H, W)


def _adain_ref(content, style, epsilon=1e-5):
    # Pure-JAX reference mirroring torch.var_mean (unbiased) semantics.
    def stats(x):
        m = jnp.mean(x, axis=(2, 3), keepdims=True)
        hw = x.shape[2] * x.shape[3]
        v = jnp.sum((x - m) ** 2, axis=(2, 3), keepdims=True) / (hw - 1)
        return v, m

    vc, mc = stats(content)
    vs, ms = stats(style)
    return jnp.sqrt(vs + epsilon) * (content - mc) / jnp.sqrt(vc + epsilon) + ms


if __name__ == "__main__":
    key = jax.random.PRNGKey(0)
    k1, k2 = jax.random.split(key)

    N, C, H, W = 2, 4, 16, 16
    content = jax.random.normal(k1, (N, C, H, W), dtype=jnp.float32) * 2.0 + 1.0
    style = jax.random.normal(k2, (N, C, H, W), dtype=jnp.float32) * 0.5 - 3.0

    out = adain(content, style)
    out = jax.block_until_ready(out)

    ref = _adain_ref(content, style)
    assert out.shape == (N, C, H, W)
    assert jnp.allclose(out, ref, atol=2e-5, rtol=2e-5), "mismatch vs reference"

    print("KERNEL_OK")
</pallas_src>

<mosaic_0001>
module attributes {stable_mosaic.version = 11 : i64} {
  func.func @_adain_kernel(%arg0: i32, %arg1: i32, %arg2: memref<1x4x256xf32, #tpu.memory_space<vmem>>, %arg3: memref<1x4x256xf32, #tpu.memory_space<vmem>>, %arg4: memref<1x4x256xf32, #tpu.memory_space<vmem>>) attributes {dimension_semantics = [#tpu.dimension_semantics<parallel>, #tpu.dimension_semantics<parallel>], iteration_bounds = array<i64: 2, 1>, scalar_prefetch = 0 : i64, scratch_operands = 0 : i64, tpu.core_type = #tpu.core_type<tc>, window_params = [{transform_indices = @transform_0, window_bounds = array<i64: 1, 4, 256>}, {transform_indices = @transform_1, window_bounds = array<i64: 1, 4, 256>}, {transform_indices = @transform_2, window_bounds = array<i64: 1, 4, 256>}]} {
    %c0 = arith.constant 0 : index
    %c0_0 = arith.constant 0 : index
    %c0_1 = arith.constant 0 : index
    %0 = vector.load %arg2[%c0, %c0_0, %c0_1] : memref<1x4x256xf32, #tpu.memory_space<vmem>>, vector<1x4x256xf32>
    %c0_2 = arith.constant 0 : index
    %c0_3 = arith.constant 0 : index
    %c0_4 = arith.constant 0 : index
    %1 = vector.load %arg3[%c0_2, %c0_3, %c0_4] : memref<1x4x256xf32, #tpu.memory_space<vmem>>, vector<1x4x256xf32>
    %cst = arith.constant dense<0.000000e+00> : vector<1x4xf32>
    %2 = vector.multi_reduction <add>, %0, %cst [2] : vector<1x4x256xf32> to vector<1x4xf32>
    %3 = vector.shape_cast %2 : vector<1x4xf32> to vector<1x4x1xf32>
    %cst_5 = arith.constant 2.560000e+02 : f32
    %4 = vector.broadcast %cst_5 : f32 to vector<1x4x1xf32>
    %5 = arith.divf %3, %4 : vector<1x4x1xf32>
    %cst_6 = arith.constant dense<0.000000e+00> : vector<1x4xf32>
    %6 = vector.multi_reduction <add>, %1, %cst_6 [2] : vector<1x4x256xf32> to vector<1x4xf32>
    %7 = vector.shape_cast %6 : vector<1x4xf32> to vector<1x4x1xf32>
    %cst_7 = arith.constant 2.560000e+02 : f32
    %8 = vector.broadcast %cst_7 : f32 to vector<1x4x1xf32>
    %9 = arith.divf %7, %8 : vector<1x4x1xf32>
    %10 = vector.broadcast %5 : vector<1x4x1xf32> to vector<1x4x256xf32>
    %11 = arith.subf %0, %10 : vector<1x4x256xf32>
    %12 = arith.mulf %11, %11 : vector<1x4x256xf32>
    %cst_8 = arith.constant dense<0.000000e+00> : vector<1x4xf32>
    %13 = vector.multi_reduction <add>, %12, %cst_8 [2] : vector<1x4x256xf32> to vector<1x4xf32>
    %14 = vector.shape_cast %13 : vector<1x4xf32> to vector<1x4x1xf32>
    %cst_9 = arith.constant 2.550000e+02 : f32
    %15 = vector.broadcast %cst_9 : f32 to vector<1x4x1xf32>
    %16 = arith.divf %14, %15 : vector<1x4x1xf32>
    %17 = vector.broadcast %9 : vector<1x4x1xf32> to vector<1x4x256xf32>
    %18 = arith.subf %1, %17 : vector<1x4x256xf32>
    %19 = arith.mulf %18, %18 : vector<1x4x256xf32>
    %cst_10 = arith.constant dense<0.000000e+00> : vector<1x4xf32>
    %20 = vector.multi_reduction <add>, %19, %cst_10 [2] : vector<1x4x256xf32> to vector<1x4xf32>
    %21 = vector.shape_cast %20 : vector<1x4xf32> to vector<1x4x1xf32>
    %cst_11 = arith.constant 2.550000e+02 : f32
    %22 = vector.broadcast %cst_11 : f32 to vector<1x4x1xf32>
    %23 = arith.divf %21, %22 : vector<1x4x1xf32>
    %cst_12 = arith.constant 9.99999974E-6 : f32
    %24 = vector.broadcast %cst_12 : f32 to vector<1x4x1xf32>
    %25 = arith.addf %16, %24 : vector<1x4x1xf32>
    %26 = math.rsqrt %25 : vector<1x4x1xf32>
    %cst_13 = arith.constant 9.99999974E-6 : f32
    %27 = vector.broadcast %cst_13 : f32 to vector<1x4x1xf32>
    %28 = arith.addf %23, %27 : vector<1x4x1xf32>
    %29 = math.sqrt %28 : vector<1x4x1xf32>
    %30 = arith.mulf %29, %26 : vector<1x4x1xf32>
    %31 = arith.mulf %30, %5 : vector<1x4x1xf32>
    %32 = arith.subf %9, %31 : vector<1x4x1xf32>
    %33 = vector.broadcast %30 : vector<1x4x1xf32> to vector<1x4x256xf32>
    %34 = arith.mulf %0, %33 : vector<1x4x256xf32>
    %35 = vector.broadcast %32 : vector<1x4x1xf32> to vector<1x4x256xf32>
    %36 = arith.addf %34, %35 : vector<1x4x256xf32>
    %c0_14 = arith.constant 0 : index
    %c0_15 = arith.constant 0 : index
    %c0_16 = arith.constant 0 : index
    %37 = vector.load %arg4[%c0_14, %c0_15, %c0_16] : memref<1x4x256xf32, #tpu.memory_space<vmem>>, vector<1x4x256xf32>
    tpu.vector_store %arg4[%c0_14, %c0_15, %c0_16], %36 {strides = array<i32>} : memref<1x4x256xf32, #tpu.memory_space<vmem>>, vector<1x4x256xf32>,
    return
  }
  func.func @transform_0(%arg0: i32, %arg1: i32) -> (i32, i32, i32) {
    %c0_i32 = arith.constant 0 : i32
    %c0_i32_0 = arith.constant 0 : i32
    return %arg0, %arg1, %c0_i32 : i32, i32, i32
  }
  func.func @transform_1(%arg0: i32, %arg1: i32) -> (i32, i32, i32) {
    %c0_i32 = arith.constant 0 : i32
    %c0_i32_0 = arith.constant 0 : i32
    return %arg0, %arg1, %c0_i32 : i32, i32, i32
  }
  func.func @transform_2(%arg0: i32, %arg1: i32) -> (i32, i32, i32) {
    %c0_i32 = arith.constant 0 : i32
    %c0_i32_0 = arith.constant 0 : i32
    return %arg0, %arg1, %c0_i32 : i32, i32, i32
  }
}

</mosaic_0001>

<bundles_post_ra>
// kernel: tpu_custom_call.1
= control target key start
LH: loop header
LB: loop body
LE: loop exit
PB: predicated region body
PF: predicated region fallthrough
CT: control target
= control target key end

     0   :  { %7 = vsyncpa [#allocation3], 0  ;;  %s940_s0 = inlined_call_operand.hbm [shape: f32[2,4,256], index: 0, kind: input, shape index: {}]   ;;  %s941_s1 = inlined_call_operand.hbm [shape: f32[2,4,256], index: 1, kind: input, shape index: {}]   ;;  %s942_s2 = inlined_call_operand.hbm [shape: f32[2,4,256], index: 2, kind: output, shape index: {}]  }
   0x1   :  { %9 = vsyncpa [#allocation3 + $0x1], 0 }
   0x2   :  { %10 = vsyncpa [#allocation6], 0 }
   0x3   :  { %12 = vsyncpa [#allocation6 + $0x1], 0 }
   0x4   :  { %13 = vsyncpa [#allocation4], 0 }
   0x5   :  { %15 = vsyncpa [#allocation4 + $0x1], 0  ;;  %s707_s9 = smov 0   ;;  %s709_s10 = smov 0  }
   0x6   :  { %s711_s11 = smov 0   ;;  %s713_s12 = smov 0  }
   0x7   :  { %s715_s13 = smov 0   ;;  %s717_s14 = smov 0  }
   0x8 LB: > { %s444_s15 = sadd.s32 4294967295, %s686_s14   ;;  %s445_s16 = sadd.s32 4294967294, %s686_s14   ;;  %s686_s14 = sphi %s717_s14, %s21_s14   ;;  %s682_s13 = sphi %s715_s13, %s962_s13   ;;  %s678_s12 = sphi %s713_s12, %s961_s12   ;;  %s674_s11 = sphi %s711_s11, %s960_s11   ;;  %s670_s10 = sphi %s709_s10, %s959_s10   ;;  %s666_s9 = sphi %s707_s9, %s958_s9  }
   0x9   : > { %s33_s17 = sadd.s32 1, %s682_s13  ;;  %s42_s18 = sadd.s32 1, %s674_s11 }
   0xa   : > { %p35_p0 = scmp.ge.s32.totalorder %s33_s17, 2  ;;  %p49_p1 = scmp.ne.s32.totalorder %s674_s11, %s670_s10 }
   0xb   : > { %p50_p2 = scmp.eq.s32.totalorder %s686_s14, 0  ;;  %p55_p3 = scmp.ne.s32.totalorder %s670_s10, %s666_s9 }
   0xc   : > { %s964_s17 = smov (%p35_p0, %s33_s17), 0  ;;  %p56_p5 = scmp.eq.s32.totalorder %s444_s15, 0 }
   0xd   : > { %p748_p4 = por %p50_p2, %p49_p1  ;;  %s37_s20 = ssub.s32 %s682_s13, %s964_s17 }
   0xe   : > { %p109_p6 = scmp.eq.s32.totalorder %s444_s15, 1  ;;  %p40_p7 = scmp.eq.s32.totalorder %s37_s20, 0 }
   0xf   : > { %p754_p8 = por %p56_p5, %p55_p3  ;;  %p115_p10 = scmp.eq.s32.totalorder %s445_s16, 1 }
  0x10   : > { %p758_p9 = por %p109_p6, %p49_p1  ;;  %p483_p13 = scmp.lt.s32.totalorder %s686_s14, 2 }
  0x11   : > { %s946_s21 = scalar_select %p754_p8, 1, 0 }
  0x12   : > { %s947_s22 = scalar_select %p758_p9, 1, 0 }
  0x13   : > { %s763_s23 = scalar_select %p40_p7, %s674_s11, %s42_s18  }
  0x14   : > { %p765_p11 = por %p115_p10, %p55_p3  ;;  %s772_s25 = sand.u32 1, %s674_s11  }
  0x15   : > { %s448_s26 = sshll.u32 %s772_s25, 3  ;;  %s463_s27 = sshll.u32 %s682_s13, 7 }
  0x16   : > { %s948_s24 = scalar_select %p765_p11, 1, 0 }
  0x17   : > { %s781_s30 = scalar_lea.hbm %s940_s0, %s463_s27  ;;  %s139_s3 = scalar_lea.vmem [#allocation2], %s448_s26 }
  0x18   : > { %s149_s4 = sshll.u32 %s139_s3, 4  ;;  %p789_p0 = pnand %p483_p13, %p748_p4  ;;  %s785_s4 = int_to_ptr.vmem [resolvable:$true] %s149_s4 }
  0x19   : > { %s136_s6 = scalar_lea.sflag [#allocation3], %s772_s25  ;;  %s540_s7 = scalar_lea.hbm %s781_s30, 128 }
  0x1a   : > { %p541_p3 = scmp.ne.s32.totalorder %s781_s30, %s540_s7  ;;  %p542_p5 = pneg %p789_p0 }
  0x1b   : > { %s545_s16 = scalar_lea.hbm %s940_s0, 256  ;;  %p546_p4 = scmp.lt.u32.totalorder %s781_s30, %s940_s0 }
  0x1c   : > { %p543_p6 = pnand %p542_p5, %p541_p3  ;;  %p547_p10 = scmp.lt.u32.totalorder %s545_s16, %s540_s7 }
  0x1d   : > { %p549_p12 = scmp.lt.u32.totalorder %s540_s7, %s781_s30 }
  0x1e   : > { %p544_p7 = pneg %p543_p6  ;;  %p548_p13 = por %p547_p10, %p546_p4 }
  0x20   : > { %p550_p1 = por %p549_p12, %p548_p13 }
  0x22   : > { %p551_p2 = pnand %p550_p1, %p544_p7 }
  0x24   : > { %554 = shalt.err (!%p551_p2)
}
  0x25   : > { %s555_s20 = scalar_lea.vmem %s785_s4, 128  ;;  %s688_s28 = smov [#allocation2]  }
  0x26   : > { %p556_p3 = scmp.ne.s32.totalorder %s785_s4, %s555_s20  ;;  %s560_s29 = sshll.u32 %s688_s28, 4  ;;  %s561_s29 = int_to_ptr.vmem [resolvable:$false] %s560_s29 }
  0x27   : > { %s562_s3 = scalar_lea.vmem %s561_s29, 256  ;;  %p563_p9 = scmp.lt.s32.totalorder %s785_s4, %s561_s29 }
  0x28   : > { %p558_p6 = pnand %p556_p3, %p542_p5  ;;  %p564_p4 = scmp.lt.s32.totalorder %s562_s3, %s555_s20 }
  0x2a   : > { %p559_p11 = pneg %p558_p6  ;;  %p565_p10 = por %p564_p4, %p563_p9 }
  0x2c   : > { %p566_p12 = pnand %p565_p10, %p559_p11 }
  0x2e   : > { %569 = shalt.err (!%p566_p12)
}
  0x2f   : > { %475 = dma.hbm_to_vmem [thread:$0]  (!%p789_p0), %s781_s30, 128, %s785_s4, %s136_s6  }
  0x30   : > { %p950_p1 = scmp.lt.s32.totalorder %s686_s14, 3  ;;  %p951_p2 = scmp.ge.s32.totalorder %s686_s14, 1 }
  0x31   : > { %s834_s16 = scalar_lea.hbm %s941_s1, %s463_s27  ;;  %s160_s18 = scalar_lea.vmem [#allocation5], %s448_s26 }
  0x32   : > { %p825_p7 = pnand %p951_p2, %p950_p1  ;;  %s170_s19 = sshll.u32 %s160_s18, 4  ;;  %s171_s19 = int_to_ptr.vmem [resolvable:$true] %s170_s19 }
  0x33   : > { %s157_s30 = scalar_lea.sflag [#allocation6], %s772_s25  ;;  %s570_s4 = scalar_lea.hbm %s834_s16, 128 }
  0x34   : > { %s952_s7 = scalar_select %p825_p7, 1, 0 }
  0x35   : > { %p571_p9 = scmp.ne.s32.totalorder %s834_s16, %s570_s4  ;;  %s575_s27 = scalar_lea.hbm %s941_s1, 256 }
  0x36   : > { %p576_p3 = scmp.lt.u32.totalorder %s834_s16, %s941_s1  ;;  %p577_p6 = scmp.lt.u32.totalorder %s575_s27, %s570_s4 }
  0x37   : > { %p573_p11 = pnand %p571_p9, %p542_p5  ;;  %p579_p10 = scmp.lt.u32.totalorder %s570_s4, %s834_s16 }
  0x38   : > { %p578_p4 = por %p577_p6, %p576_p3 }
  0x39   : > { %p574_p13 = pneg %p573_p11 }
  0x3a   : > { %p580_p12 = por %p579_p10, %p578_p4 }
  0x3c   : > { %p581_p1 = pnand %p580_p12, %p574_p13 }
  0x3e   : > { %584 = shalt.err (!%p581_p1)
}
  0x3f   : > { %s585_s25 = scalar_lea.vmem %s171_s19, 128  ;;  %s689_s26 = smov [#allocation5]  }
  0x40   : > { %p586_p2 = scmp.ne.s32.totalorder %s171_s19, %s585_s25  ;;  %s590_s3 = sshll.u32 %s689_s26, 4  ;;  %s591_s3 = int_to_ptr.vmem [resolvable:$false] %s590_s3 }
  0x41   : > { %s592_s8 = scalar_lea.vmem %s591_s3, 256  ;;  %p593_p8 = scmp.lt.s32.totalorder %s171_s19, %s591_s3 }
  0x42   : > { %p588_p9 = pnand %p586_p2, %p542_p5  ;;  %p594_p7 = scmp.lt.s32.totalorder %s592_s8, %s585_s25 }
  0x44   : > { %p589_p11 = pneg %p588_p9  ;;  %p595_p3 = por %p594_p7, %p593_p8 }
  0x46   : > { %p596_p6 = pnand %p595_p3, %p589_p11 }
  0x48   : > { %599 = shalt.err (!%p596_p6)
}
  0x49   : > { %478 = dma.hbm_to_vmem [thread:$0]  (!%p789_p0), %s834_s16, 128, %s171_s19, %s157_s30  }
  0x4a   : > { %p953_p13 = scmp.ne.s32.totalorder %s952_s7, 0 }
  0x4b   : > { %s861_s15 = sand.u32 (!%p953_p13), 1, %s670_s10   ;;  %p954_p8 = scmp.ne.s32.totalorder (!%p953_p13), %s946_s21, 0 }
  0x4c   : > { %179 = sbr.rel (%p953_p13) target bundleno = 432 (0x1b0), region = 28  ;;  %s864_s18 = sshll.u32 (!%p953_p13), %s861_s15, 3 }
  0x4d   : > { %s182_s4 = scalar_lea.sflag (!%p953_p13), [#allocation3], %s861_s15  ;;  %s185_s6 = scalar_lea.vmem (!%p953_p13), [#allocation2], %s864_s18 }
  0x53   : > { %653 = dma.done.wait (%p954_p8), %s182_s4, 128  }
  0x54   : > { %655 = vsyncadd (%p954_p8), %s182_s4, 4294967168  ;;  %s191_s5 = scalar_lea.sflag [#allocation6], %s861_s15  ;;  %s194_s7 = scalar_lea.vmem [#allocation5], %s864_s18 }
  0x55   : > { %657 = dma.done.wait (%p954_p8), %s191_s5, 128  }
  0x56   : > { %659 = vsyncadd (%p954_p8), %s191_s5, 4294967168  ;;  %vm225_vm0 = vcmask 1043456   ;;  %v221_v0 = vld [vmem:[%s194_s7] sm:$0xff]  ;;  %v220_v1 = vld [vmem:[%s185_s6] sm:$0xff]  ;;  %v690_v10 = vmov 839922192   ;;  %v246_v12 = vlaneseq }
  0x57   : > { %v234_v2 = vcombine.high %v221_v0, %v221_v0  ;;  %v236_v3 = vsel %vm225_vm0, %v221_v0, 0.0  ;;  %v223_v4 = vcombine.high %v220_v1, %v220_v1  ;;  %v226_v6 = vsel %vm225_vm0, %v220_v1, 0.0  ;;  %s465_s21 = sshll.u32 %s678_s12, 7  ;;  %s219_s16 = scalar_lea.vmem [#allocation7], %s864_s18 }
  0x58   : > { %v244_v11 = vunpack.c.l.s4 %v690_v10  ;;  %v247_v14 = vshrl.u32 %v246_v12, 7  ;;  %s334_s19 = sshll.u32 %s219_s16, 4  ;;  %s891_s27 = scalar_lea.hbm %s942_s2, %s465_s21  ;;  %s893_s19 = int_to_ptr.vmem [resolvable:$true] %s334_s19 }
  0x59   : > { %v237_v5 = vsel %vm225_vm0, %v234_v2, 0.0  ;;  %v227_v7 = vsel %vm225_vm0, %v223_v4, 0.0  ;;  %s318_s28 = scalar_lea.sflag [#allocation4], %s861_s15  ;;  %s600_s29 = scalar_lea.vmem %s893_s19, 128 }
  0x5a   : > { %v238_v8 = vadd.f32 %v237_v5, %v236_v3  ;;  %v228_v9 = vadd.f32 %v227_v7, %v226_v6  ;;  %v245_v13 = vunpack.c.0.s8 %v244_v11  ;;  %p601_p0 = scmp.ne.s32.totalorder %s893_s19, %s600_s29  ;;  %p955_p5 = scmp.ne.s32.totalorder %s947_s22, 0 }
  0x5b   : > { %s691_s12 = smov [#allocation7]  }
  0x5c   : > { %239 = vadd.xlane.f32.xlu0 %v238_v8  ;;  %v248_v15 = vsub.s32 %v245_v13, %v247_v14  ;;  %p602_p7 = pnand %p601_p0, %p955_p5  ;;  %s604_s25 = sshll.u32 %s691_s12, 4  ;;  %s605_s25 = int_to_ptr.vmem [resolvable:$false] %s604_s25 }
  0x5d   : > { %s606_s26 = scalar_lea.vmem %s605_s25, 256  ;;  %p607_p10 = scmp.lt.s32.totalorder %s893_s19, %s605_s25 }
  0x5e   : > { %p603_p4 = pneg %p602_p7  ;;  %p608_p12 = scmp.lt.s32.totalorder %s606_s26, %s600_s29 }
  0x60   : > { %229 = vadd.xlane.f32.xlu0 %v228_v9  ;;  %p609_p1 = por %p608_p12, %p607_p10 }
  0x62   : > { %p610_p2 = pnand %p609_p1, %p603_p4 }
  0xe9   : > { %v240_v16 = vpop.xlane.xlu0 %239 }
  0xea   : > { %v241_v17 = vmul.f32 0.00390625, %v240_v16 }
  0xec   : > { %v270_v18 = vrot.slane %v241_v17, %v248_v15 }
  0xed   : > { %v230_v19 = vpop.xlane.xlu0 %229 }
  0xee   : > { %v232_v20 = vmul.f32 0.00390625, %v230_v19  ;;  %v272_v21 = vsub.f32 %v221_v0, %v270_v18 }
  0xf0   : > { %v249_v22 = vrot.slane %v232_v20, %v248_v15  ;;  %v273_v23 = vmul.f32 %v272_v21, %v272_v21 }
  0xf2   : > { %v251_v24 = vsub.f32 %v220_v1, %v249_v22  ;;  %v275_v25 = vcombine.high %v273_v23, %v273_v23  ;;  %v277_v27 = vsel %vm225_vm0, %v273_v23, 0.0 }
  0xf4   : > { %v252_v26 = vmul.f32 %v251_v24, %v251_v24  ;;  %v278_v28 = vsel %vm225_vm0, %v275_v25, 0.0 }
  0xf5   : > { %v279_v29 = vadd.f32 %v278_v28, %v277_v27 }
  0xf6   : > { %v254_v30 = vcombine.high %v252_v26, %v252_v26  ;;  %v256_v31 = vsel %vm225_vm0, %v252_v26, 0.0 }
  0xf7   : > { %280 = vadd.xlane.f32.xlu1 %v279_v29 }
  0xf8   : > { %v257_v32 = vsel %vm225_vm0, %v254_v30, 0.0 }
  0xf9   : > { %v258_v33 = vadd.f32 %v257_v32, %v256_v31 }
  0xfb   : > { %259 = vadd.xlane.f32.xlu1 %v258_v33 }
 0x184   : > { %v281_v34 = vpop.xlane.xlu1 %280 }
 0x185   : > { %v282_v35 = vmul.f32 0.003921569, %v281_v34 }
 0x187   : > { %v285_v36 = vadd.f32 1e-05, %v282_v35 }
 0x188   : > { %v260_v37 = vpop.xlane.xlu1 %259 }
 0x189   : > { %536 = vrsqrt.f32 %v285_v36  ;;  %v262_v38 = vmul.f32 0.003921569, %v260_v37  ;;  %vm288_vm1 = vcmp.eq.f32.partialorder %v285_v36, inf  ;;  %v291_v42 = vand.u32 2147483648, %v285_v36 }
 0x18a   : > { %vm290_vm2 = vcmp.eq.f32.partialorder %v285_v36, 0.0 }
 0x18b   : > { %v283_v39 = vadd.f32 1e-05, %v262_v38 }
 0x18d   : > { %538 = vrsqrt.f32 %v283_v39 }
 0x193   : > { %v537_v40 = vpop.eup %536 }
 0x194   : > { %v287_v41 = vmul.f32 %v537_v40, %v285_v36 }
 0x196   : > { %v289_v43 = vsel %vm288_vm1, %v285_v36, %v287_v41 }
 0x197   : > { %v292_v44 = vsel %vm290_vm2, %v291_v42, %v289_v43  ;;  %v539_v45 = vpop.eup %538 }
 0x198   : > { %v293_v46 = vmul.f32 %v539_v45, %v292_v44 }
 0x19a   : > { %v294_v47 = vmul.f32 %v293_v46, %v232_v20  ;;  %v303_v48 = vrot.slane %v293_v46, %v248_v15 }
 0x19c   : > { %v295_v49 = vsub.f32 %v241_v17, %v294_v47  ;;  %v305_v50 = vmul.f32 %v303_v48, %v220_v1 }
 0x19e   : > { %v313_v51 = vrot.slane %v295_v49, %v248_v15 }
 0x1a0   : > { %v315_v52 = vadd.f32 %v313_v51, %v305_v50 }
 0x1a2   : > { %316 = vst [vmem:[%s219_s16] sm:$0xff] %v315_v52 }
 0x1a3   : > { %613 = shalt.err (!%p610_p2)
}
 0x1a4   : > { %s614_s3 = scalar_lea.hbm %s891_s27, 128  ;;  %s618_s18 = scalar_lea.hbm %s942_s2, 256 }
 0x1a5   : > { %p615_p9 = scmp.ne.s32.totalorder %s891_s27, %s614_s3  ;;  %p619_p6 = scmp.lt.u32.totalorder %s891_s27, %s942_s2 }
 0x1a6   : > { %p620_p13 = scmp.lt.u32.totalorder %s618_s18, %s614_s3  ;;  %p622_p0 = scmp.lt.u32.totalorder %s614_s3, %s891_s27 }
 0x1a7   : > { %p616_p11 = pnand %p615_p9, %p955_p5 }
 0x1a8   : > { %p621_p8 = por %p620_p13, %p619_p6 }
 0x1a9   : > { %p617_p3 = pneg %p616_p11 }
 0x1aa   : > { %p623_p7 = por %p622_p0, %p621_p8 }
 0x1ac   : > { %p624_p4 = pnand %p623_p7, %p617_p3 }
 0x1ae   : > { %627 = shalt.err (!%p624_p4)
}
 0x1af   : > { %470 = dma.vmem_to_hbm [thread:$0]  (%p955_p5), %s893_s19, 128, %s891_s27, %s318_s28  }
 0x1b0 PF: > { %s346_s5 = sand.u32 1, %s666_s9   ;;  %p956_p10 = scmp.ne.s32.totalorder %s948_s24, 0 }
 0x1b1   : > { %p957_p12 = scmp.ge.s32.totalorder %s686_s14, 2  ;;  %s347_s7 = scalar_lea.sflag [#allocation4], %s346_s5 }
 0x1b3   : > { %p480_p1 = pnand %p957_p12, %p956_p10 }
 0x1b5   : > { %661 = dma.done.wait (!%p480_p1), %s347_s7, 128  }
 0x1b6   : > { %663 = vsyncadd (!%p480_p1), %s347_s7, 4294967168  ;;  %s21_s14 = sadd.s32 1, %s686_s14   ;;  %s958_s9 = smov %s670_s10 }
 0x1b7   : > { %p18_p2 = scmp.ge.s32.totalorder %s21_s14, 4   ;;  %s959_s10 = smov %s674_s11 }
 0x1b8   : > { %s960_s11 = smov %s763_s23  ;;  %s961_s12 = smov %s682_s13 }
 0x1b9   : > { %s962_s13 = smov %s964_s17  ;;  %20 = sbr.rel (!%p18_p2) target bundleno = 8 (0x8), region = 86 }
 0x1c0   :  { %352 = vsyncpa [#allocation3], 1 }
 0x1c1   :  { %354 = vsyncpa [#allocation3 + $0x1], 1 }
 0x1c2   :  { %355 = vsyncpa [#allocation6], 1 }
 0x1c3   :  { %357 = vsyncpa [#allocation6 + $0x1], 1 }
 0x1c4   :  { %358 = vsyncpa [#allocation4], 1 }
 0x1c5   :  { %360 = vsyncpa [#allocation4 + $0x1], 1 }

</bundles_post_ra>
